<compile_context>
chip_gen: v7x
topology: tpu7x:2x2x1
jax: 0.10.0
libtpu: 0.0.40
codegen_flags: <defaults>
</compile_context>

<pallas_src>
import jax
import jax.numpy as jnp
from jax.experimental import pallas as pl
from jax.experimental.pallas import tpu as pltpu


def _norm_cols_kernel(x_ref, sb_ref, o_ref):
    # x: (TR, THW); sb: (TR, 2) with col 0 = scale (1/std), col 1 = bias (-mean/std).
    # Per-row scalars broadcast along the lane axis.
    scale = sb_ref[:, 0:1]
    bias = sb_ref[:, 1:2]
    o_ref[...] = x_ref[...] * scale + bias


def _norm_rows_kernel(x_ref, sb_ref, o_ref):
    # x: (TR, THW); sb: (2, THW) with row 0 = scale, row 1 = bias.
    # Per-lane values broadcast along the sublane axis.
    scale = sb_ref[0:1, :]
    bias = sb_ref[1:2, :]
    o_ref[...] = x_ref[...] * scale + bias


def _sublane_quantum(dtype):
    itemsize = jnp.dtype(dtype).itemsize
    return {4: 8, 2: 16, 1: 32}.get(itemsize, 8)


def _tile(total, cap, quantum):
    """Fixed tile size: full extent if it fits under the cap (always a legal
    block dim), otherwise the largest multiple of `quantum` <= cap.  Ragged
    edges are handled by a cdiv grid + Pallas masking."""
    if total <= cap:
        return total
    return max((cap // quantum) * quantum, quantum)


def normalization_forward(img, mean, std):
    """(img - mean[:, None, None]) / std[:, None, None] for img of shape (N, C, H, W)."""
    N, C, H, W = img.shape
    HW = H * W
    dtype = img.dtype

    # Hoist the divides out of the hot loop (C scalars, exact f32 divide in the
    # wrapper).  out = x * scale + bias  ==  (x - mean) / std  to within ~1 ULP.
    std_f32 = std.astype(jnp.float32)
    mean_f32 = mean.astype(jnp.float32)
    scale_c = (1.0 / std_f32).astype(dtype)
    bias_c = (-mean_f32 / std_f32).astype(dtype)

    sub_q = _sublane_quantum(dtype)
    lane_q = 128
    TR_CAP, THW_CAP = 512, 4096  # ~4-8 MiB f32 blocks; amortizes per-step overhead.

    lane_dense_hw = (HW >= lane_q) and (HW % lane_q == 0)

    if lane_dense_hw:
        # (N*C, H*W) view; per-(n,c) scale/bias live in a tiny (R, 2) column pair.
        R = N * C
        x2d = img.reshape(R, HW)
        sb = jnp.stack([jnp.tile(scale_c, N), jnp.tile(bias_c, N)], axis=1)  # (R, 2)

        TR = _tile(R, TR_CAP, sub_q)
        THW = _tile(HW, THW_CAP, lane_q)
        grid = (pl.cdiv(R, TR), pl.cdiv(HW, THW))

        kernel = _norm_cols_kernel
        in_specs = [
            pl.BlockSpec((TR, THW), lambda i, j: (i, j)),
            pl.BlockSpec((TR, 2), lambda i, j: (i, 0)),
        ]
        out_specs = pl.BlockSpec((TR, THW), lambda i, j: (i, j))
        out2d_shape = (R, HW)
    else:
        # Awkward H*W (e.g. 7*7=49): fold to (N, C*H*W) so the last block dim
        # stays lane-dense; scale/bias become (2, C*H*W) rows broadcast over N.
        CHW = C * HW
        R = N
        x2d = img.reshape(R, CHW)
        sb = jnp.stack(
            [jnp.repeat(scale_c, HW), jnp.repeat(bias_c, HW)], axis=0
        )  # (2, CHW)

        TR = _tile(R, TR_CAP, sub_q)
        THW = _tile(CHW, THW_CAP, lane_q)
        grid = (pl.cdiv(R, TR), pl.cdiv(CHW, THW))

        kernel = _norm_rows_kernel
        in_specs = [
            pl.BlockSpec((TR, THW), lambda i, j: (i, j)),
            pl.BlockSpec((2, THW), lambda i, j: (0, j)),
        ]
        out_specs = pl.BlockSpec((TR, THW), lambda i, j: (i, j))
        out2d_shape = (R, CHW)

    itemsize = jnp.dtype(dtype).itemsize
    cost = pl.CostEstimate(
        flops=2 * img.size,                      # one mul + one add per element
        bytes_accessed=2 * img.size * itemsize,  # read img + write out (side input negligible)
        transcendentals=0,
    )

    out2d = pl.pallas_call(
        kernel,
        out_shape=jax.ShapeDtypeStruct(out2d_shape, dtype),
        grid=grid,
        in_specs=in_specs,
        out_specs=out_specs,
        compiler_params=pltpu.CompilerParams(
            dimension_semantics=("parallel", "parallel"),
            vmem_limit_bytes=48 * 1024 * 1024,
        ),
        cost_estimate=cost,
    )(x2d, sb)

    return out2d.reshape(N, C, H, W)


if __name__ == "__main__":
    key = jax.random.PRNGKey(0)
    k_img, k_mean, k_std, k_img2 = jax.random.split(key, 4)

    # Primary check: lane-dense H*W path.
    N, C, H, W = 2, 4, 16, 16
    img = jax.random.normal(k_img, (N, C, H, W), dtype=jnp.float32)
    mean = jax.random.normal(k_mean, (C,), dtype=jnp.float32) * 0.1 + 0.5
    std = jax.random.uniform(k_std, (C,), dtype=jnp.float32, minval=0.2, maxval=0.3)

    out = normalization_forward(img, mean, std)
    out = jax.block_until_ready(out)
    ref = (img - mean.reshape(1, C, 1, 1)) / std.reshape(1, C, 1, 1)
    assert out.shape == (N, C, H, W)
    assert jnp.allclose(out, ref, atol=1e-5, rtol=1e-5)

    # Secondary check: awkward H*W (7x7) exercises the (N, C*H*W) fold path.
    H2, W2 = 7, 7
    img2 = jax.random.normal(k_img2, (N, C, H2, W2), dtype=jnp.float32)
    out2 = normalization_forward(img2, mean, std)
    out2 = jax.block_until_ready(out2)
    ref2 = (img2 - mean.reshape(1, C, 1, 1)) / std.reshape(1, C, 1, 1)
    assert out2.shape == (N, C, H2, W2)
    assert jnp.allclose(out2, ref2, atol=1e-5, rtol=1e-5)

    print("KERNEL_OK")
</pallas_src>

<mosaic_0001>
module attributes {stable_mosaic.version = 11 : i64} {
  func.func @_norm_cols_kernel(%arg0: i32, %arg1: i32, %arg2: memref<8x256xf32, #tpu.memory_space<vmem>>, %arg3: memref<8x2xf32, #tpu.memory_space<vmem>>, %arg4: memref<8x256xf32, #tpu.memory_space<vmem>>) attributes {dimension_semantics = [#tpu.dimension_semantics<parallel>, #tpu.dimension_semantics<parallel>], iteration_bounds = array<i64: 1, 1>, scalar_prefetch = 0 : i64, scratch_operands = 0 : i64, tpu.core_type = #tpu.core_type<tc>, window_params = [{transform_indices = @transform_0, window_bounds = array<i64: 8, 256>}, {transform_indices = @transform_1, window_bounds = array<i64: 8, 2>}, {transform_indices = @transform_2, window_bounds = array<i64: 8, 256>}]} {
    %c0 = arith.constant 0 : index
    %c0_0 = arith.constant 0 : index
    %0 = vector.load %arg3[%c0, %c0_0] : memref<8x2xf32, #tpu.memory_space<vmem>>, vector<8x1xf32>
    %c0_1 = arith.constant 0 : index
    %c1 = arith.constant 1 : index
    %1 = vector.load %arg3[%c0_1, %c1] : memref<8x2xf32, #tpu.memory_space<vmem>>, vector<8x1xf32>
    %c0_2 = arith.constant 0 : index
    %c0_3 = arith.constant 0 : index
    %2 = vector.load %arg2[%c0_2, %c0_3] : memref<8x256xf32, #tpu.memory_space<vmem>>, vector<8x256xf32>
    %3 = vector.broadcast %0 : vector<8x1xf32> to vector<8x256xf32>
    %4 = arith.mulf %2, %3 : vector<8x256xf32>
    %5 = vector.broadcast %1 : vector<8x1xf32> to vector<8x256xf32>
    %6 = arith.addf %4, %5 : vector<8x256xf32>
    %c0_4 = arith.constant 0 : index
    %c0_5 = arith.constant 0 : index
    %7 = vector.load %arg4[%c0_4, %c0_5] : memref<8x256xf32, #tpu.memory_space<vmem>>, vector<8x256xf32>
    tpu.vector_store %arg4[%c0_4, %c0_5], %6 {strides = array<i32>} : memref<8x256xf32, #tpu.memory_space<vmem>>, vector<8x256xf32>,
    return
  }
  func.func @transform_0(%arg0: i32, %arg1: i32) -> (i32, i32) {
    %c0_i32 = arith.constant 0 : i32
    return %arg0, %arg1 : i32, i32
  }
  func.func @transform_1(%arg0: i32, %arg1: i32) -> (i32, i32) {
    %c0_i32 = arith.constant 0 : i32
    %c0_i32_0 = arith.constant 0 : i32
    return %arg0, %c0_i32 : i32, i32
  }
  func.func @transform_2(%arg0: i32, %arg1: i32) -> (i32, i32) {
    %c0_i32 = arith.constant 0 : i32
    return %arg0, %arg1 : i32, i32
  }
}

</mosaic_0001>

<bundles_post_ra>
// kernel: tpu_custom_call.1
= control target key start
LH: loop header
LB: loop body
LE: loop exit
PB: predicated region body
PF: predicated region fallthrough
CT: control target
= control target key end

     0   :  { %7 = vsyncpa [#allocation3], 0  ;;  %s157_s0 = inlined_call_operand.hbm [shape: f32[8,256], index: 0, kind: input, shape index: {}]   ;;  %s158_s1 = inlined_call_operand.vmem [shape: f32[8,2], index: 1, kind: input, shape index: {}]   ;;  %s159_s2 = inlined_call_operand.hbm [shape: f32[8,256], index: 2, kind: output, shape index: {}]  }
   0x1   :  { %8 = vsyncpa [#allocation4], 0  ;;  %s111_s9 = smov [#allocation2]   ;;  %s63_s13 = scalar_lea.hbm %s157_s0, 256 }
   0x2   :  { %s15_s10 = sshll.u32 %s111_s9, 4  ;;  %p64_p0 = scmp.ne.s32.totalorder %s157_s0, %s63_s13  ;;  %s16_s10 = int_to_ptr.vmem [resolvable:$true] %s15_s10 }
   0x3   :  { %p67_p1 = scmp.lt.u32.totalorder %s63_s13, %s157_s0 }
   0x5   :  { %p69_p2 = pnand %p67_p1, %p64_p0 }
   0x7   :  { %72 = shalt.err (!%p69_p2)
}
   0x8   :  { %s73_s18 = scalar_lea.vmem %s16_s10, 256  ;;  %p78_p4 = scmp.lt.s32.totalorder %s16_s10, %s16_s10 }
   0x9   :  { %p74_p3 = scmp.ne.s32.totalorder %s16_s10, %s73_s18  ;;  %p79_p5 = scmp.lt.s32.totalorder %s73_s18, %s73_s18 }
   0xb   :  { %p80_p6 = por %p79_p5, %p78_p4 }
   0xd   :  { %p81_p7 = pnand %p80_p6, %p74_p3 }
   0xf   :  { %84 = shalt.err (!%p81_p7)
}
  0x10   :  { %18 = dma.hbm_to_vmem [thread:$0]  %s157_s0, 256, %s16_s10, [#allocation3]  }
  0x11   :  { %107 = dma.done.wait [#allocation3], 256  }
  0x12   :  { %108 = vsyncadd [#allocation3], 4294967040  ;;  %v112_v0 = vmov 0   ;;  %v24_v1 = vld [vmem:[%s158_s1] sm:$0xff]  ;;  %v113_v2 = vmov 1   ;;  %v26_v5 = vld [vmem:[#allocation2 + $0x8] sm:$0xff] }
  0x13   :  { %61 = vset.pattern.permute.xlu0 %v112_v0  ;;  %v25_v4 = vld [vmem:[#allocation2] sm:$0xff]  ;;  %s114_s23 = smov [#allocation5]  }
  0x14   :  { %29 = vperm.xlu0 %61, %v24_v1   ;;  %s48_s24 = sshll.u32 %s114_s23, 4  ;;  %s49_s24 = int_to_ptr.vmem [resolvable:$true] %s48_s24 }
  0x15   :  { %s85_s0 = scalar_lea.vmem %s49_s24, 256  ;;  %p90_p9 = scmp.lt.s32.totalorder %s49_s24, %s49_s24 }
  0x16   :  { %p86_p8 = scmp.ne.s32.totalorder %s49_s24, %s85_s0  ;;  %p91_p10 = scmp.lt.s32.totalorder %s85_s0, %s85_s0 }
  0x18   :  { %62 = vset.pattern.permute.xlu0 %v113_v2  ;;  %p92_p11 = por %p91_p10, %p90_p9 }
  0x19   :  { %35 = vperm.xlu0 %62, %v24_v1  }
  0x1a   :  { %p93_p12 = pnand %p92_p11, %p86_p8 }
  0x93   :  { %v30_v3 = vpop.permute.xlu0 %29 }
  0x94   :  { %v32_v6 = vmul.f32 %v30_v3, %v25_v4  ;;  %v33_v7 = vmul.f32 %v30_v3, %v26_v5 }
  0x98   :  { %v36_v8 = vpop.permute.xlu0 %35 }
  0x99   :  { %v38_v9 = vadd.f32 %v36_v8, %v32_v6  ;;  %v39_v10 = vadd.f32 %v36_v8, %v33_v7 }
  0x9b   :  { %40 = vst [vmem:[#allocation5] sm:$0xff] %v38_v9  ;;  %41 = vst [vmem:[#allocation5 + $0x8] sm:$0xff] %v39_v10 }
  0x9c   :  { %96 = shalt.err (!%p93_p12)
}
  0x9d   :  { %s97_s26 = scalar_lea.hbm %s159_s2, 256 }
  0x9e   :  { %p98_p13 = scmp.ne.s32.totalorder %s159_s2, %s97_s26  ;;  %p101_p0 = scmp.lt.u32.totalorder %s97_s26, %s159_s2 }
  0xa0   :  { %p103_p1 = pnand %p101_p0, %p98_p13 }
  0xa2   :  { %106 = shalt.err (!%p103_p1)
}
  0xa3   :  { %51 = dma.vmem_to_hbm [thread:$0]  %s49_s24, 256, %s159_s2, [#allocation4]  }
  0xa4   :  { %109 = dma.done.wait [#allocation4], 256  }
  0xa5   :  { %110 = vsyncadd [#allocation4], 4294967040 }
  0xa6   :  { %55 = vsyncpa [#allocation3], 1 }
  0xa7   :  { %56 = vsyncpa [#allocation4], 1 }

</bundles_post_ra>
